<compile_context>
chip_gen: v7x
topology: tpu7x:2x2x1
jax: 0.10.0
libtpu: 0.0.40
codegen_flags: <defaults>
</compile_context>

<pallas_src>
import jax
import jax.numpy as jnp
from jax.experimental import pallas as pl
from jax.experimental.pallas import tpu as pltpu


def _round_up(x: int, m: int) -> int:
    return (x + m - 1) // m * m


def _vmem_capacity_bytes() -> int:
    try:
        cap = getattr(pltpu.get_tpu_info(), "vmem_capacity_bytes", None)
        if cap:
            return int(cap)
    except Exception:
        pass
    return 64 * 1024 * 1024  # conservative (v7x) fallback


def _mlp_kernel(x_ref, w1_ref, b1_ref, w2_ref, b2_ref, o_ref):
    # fc1: (TB, D) @ (D, H) -> f32 accumulate on the MXU.
    h = jnp.dot(x_ref[...], w1_ref[...], preferred_element_type=jnp.float32)
    # Bias add + ReLU in f32 on the VPU (v5e has no bf16 VPU).
    h = jnp.maximum(h + b1_ref[...], 0.0)
    # fc2: (TB, H) @ (H, C) -> f32 accumulate.
    out = jnp.dot(h.astype(w2_ref.dtype), w2_ref[...],
                  preferred_element_type=jnp.float32)
    o_ref[...] = (out + b2_ref[...]).astype(o_ref.dtype)


def mlp_emotion_classifier(x, w1, b1, w2, b2, *, block_batch=8192,
                           mxu_dtype=jnp.bfloat16, out_dtype=jnp.float32):
    """Forward of MLP_EmotionClassifier: y = relu(x @ W1 + b1) @ W2 + b2.

    x:  (B, input_dim)
    w1: (input_dim, hidden_dim)    (transposed vs. torch's (hidden, input))
    b1: (1, hidden_dim)
    w2: (hidden_dim, num_classes)
    b2: (1, num_classes)
    returns: (B, num_classes) logits (out_dtype, default f32)
    """
    B, D = x.shape
    H = w1.shape[1]
    C = w2.shape[1]

    in_item = jnp.dtype(mxu_dtype).itemsize
    out_item = jnp.dtype(out_dtype).itemsize

    # ---- batch tiling (generation-aware VMEM budget) -------------------------
    row_align = 16 if in_item < 4 else 8          # bf16 packs 2 rows per sublane
    B_al = _round_up(B, row_align)

    resident = (D * H + H * C) * in_item + (H + C) * 4      # weights + f32 biases
    usable = (_vmem_capacity_bytes() * 3) // 4              # ~48 MiB v7x, ~96 MiB v5e/v6e
    per_row_db = 2 * (D * in_item + C * out_item)           # double-buffered x+out per row
    stream_budget = max(usable - resident - (4 << 20), 2 << 20)

    TB = min(_round_up(block_batch, row_align),
             max((stream_budget // per_row_db) // row_align * row_align, row_align),
             B_al)
    if B_al >= 2 * row_align:          # guarantee >=2 grid steps -> both v7x TCs busy
        TB = min(TB, _round_up(pl.cdiv(B_al, 2), row_align))
    TB = max(TB, row_align)

    B_pad = _round_up(B_al, TB)
    n_tiles = B_pad // TB

    vmem_limit = int(min(usable,
                         max(resident + TB * per_row_db + (2 << 20), 16 << 20)))

    # ---- operand prep (skip extra HBM passes when already aligned/typed) -----
    x_c = x if x.dtype == mxu_dtype else x.astype(mxu_dtype)
    x_in = x_c if B_pad == B else jnp.zeros((B_pad, D), mxu_dtype).at[:B, :].set(x_c)
    # NOTE: for serving-style repeated calls with fixed weights, hoist these
    # casts out of the wrapper (precompute once per parameter update).
    w1_c = w1 if w1.dtype == mxu_dtype else w1.astype(mxu_dtype)
    w2_c = w2 if w2.dtype == mxu_dtype else w2.astype(mxu_dtype)
    b1_c = b1.astype(jnp.float32).reshape(1, H)
    b2_c = b2.astype(jnp.float32).reshape(1, C)

    # ---- specs: streamed x / out tiles, resident weights ----------------------
    in_specs = [
        pl.BlockSpec((TB, D), lambda i: (i, 0)),   # x: streamed per batch tile
        pl.BlockSpec((D, H), lambda i: (0, 0)),    # w1: resident in VMEM
        pl.BlockSpec((1, H), lambda i: (0, 0)),    # b1: resident
        pl.BlockSpec((H, C), lambda i: (0, 0)),    # w2: resident
        pl.BlockSpec((1, C), lambda i: (0, 0)),    # b2: resident
    ]
    out_spec = pl.BlockSpec((TB, C), lambda i: (i, 0))

    out = pl.pallas_call(
        _mlp_kernel,
        out_shape=jax.ShapeDtypeStruct((B_pad, C), out_dtype),
        grid=(n_tiles,),
        in_specs=in_specs,
        out_specs=out_spec,
        compiler_params=pltpu.CompilerParams(
            dimension_semantics=("parallel",),
            vmem_limit_bytes=vmem_limit,
        ),
    )(x_in, w1_c, b1_c, w2_c, b2_c)

    # Only a row slice, and only when rows were padded; consumers that can take
    # the padded slab should use the kernel output directly to avoid this copy.
    return out if B_pad == B else out[:B]


def init_params(key, input_dim, hidden_dim, num_classes):
    """Deterministic PyTorch-style (uniform +/- 1/sqrt(fan_in)) init."""
    k1, k2, k3, k4 = jax.random.split(key, 4)
    bound1 = 1.0 / (input_dim ** 0.5)
    bound2 = 1.0 / (hidden_dim ** 0.5)
    w1 = jax.random.uniform(k1, (input_dim, hidden_dim), jnp.float32,
                            -bound1, bound1)
    b1 = jax.random.uniform(k2, (1, hidden_dim), jnp.float32, -bound1, bound1)
    w2 = jax.random.uniform(k3, (hidden_dim, num_classes), jnp.float32,
                            -bound2, bound2)
    b2 = jax.random.uniform(k4, (1, num_classes), jnp.float32, -bound2, bound2)
    return w1, b1, w2, b2


if __name__ == "__main__":
    key = jax.random.PRNGKey(0)
    batch, input_dim, hidden_dim, num_classes = 8, 40, 32, 8

    kx, kp = jax.random.split(key)
    x = jax.random.normal(kx, (batch, input_dim), jnp.float32)
    w1, b1, w2, b2 = init_params(kp, input_dim, hidden_dim, num_classes)

    out = mlp_emotion_classifier(x, w1, b1, w2, b2)
    out = jax.block_until_ready(out)
    assert out.shape == (batch, num_classes)
    assert bool(jnp.all(jnp.isfinite(out)))

    # Reference with the same bf16 MXU operands / f32 accumulation (tight check).
    xb, w1b, w2b = (a.astype(jnp.bfloat16) for a in (x, w1, w2))
    h_ref = jnp.maximum(
        jnp.dot(xb, w1b, preferred_element_type=jnp.float32) + b1, 0.0)
    ref_bf16 = jnp.dot(h_ref.astype(jnp.bfloat16), w2b,
                       preferred_element_type=jnp.float32) + b2
    assert jnp.allclose(out, ref_bf16, atol=2e-3, rtol=2e-3)

    # Sanity check against the pure-f32 reference (loose: bf16 operand error).
    ref_f32 = jnp.maximum(x @ w1 + b1, 0.0) @ w2 + b2
    assert jnp.allclose(out, ref_f32, atol=5e-2, rtol=5e-2)

    print("KERNEL_OK")
</pallas_src>

<mosaic_0001>
module attributes {stable_mosaic.version = 11 : i64} {
  func.func @_mlp_kernel(%arg0: i32, %arg1: memref<16x40xbf16, #tpu.memory_space<vmem>>, %arg2: memref<40x32xbf16, #tpu.memory_space<vmem>>, %arg3: memref<1x32xf32, #tpu.memory_space<vmem>>, %arg4: memref<32x8xbf16, #tpu.memory_space<vmem>>, %arg5: memref<1x8xf32, #tpu.memory_space<vmem>>, %arg6: memref<16x8xf32, #tpu.memory_space<vmem>>) attributes {dimension_semantics = [#tpu.dimension_semantics<parallel>], iteration_bounds = array<i64: 1>, scalar_prefetch = 0 : i64, scratch_operands = 0 : i64, tpu.core_type = #tpu.core_type<tc>, window_params = [{transform_indices = @transform_0, window_bounds = array<i64: 16, 40>}, {pipeline_mode = #tpu.pipeline_mode<synchronous>, transform_indices = @transform_1, window_bounds = array<i64: 40, 32>}, {pipeline_mode = #tpu.pipeline_mode<synchronous>, transform_indices = @transform_2, window_bounds = array<i64: 1, 32>}, {pipeline_mode = #tpu.pipeline_mode<synchronous>, transform_indices = @transform_3, window_bounds = array<i64: 32, 8>}, {pipeline_mode = #tpu.pipeline_mode<synchronous>, transform_indices = @transform_4, window_bounds = array<i64: 1, 8>}, {transform_indices = @transform_5, window_bounds = array<i64: 16, 8>}]} {
    %c0 = arith.constant 0 : index
    %c0_0 = arith.constant 0 : index
    %0 = vector.load %arg1[%c0, %c0_0] : memref<16x40xbf16, #tpu.memory_space<vmem>>, vector<16x40xbf16>
    %c0_1 = arith.constant 0 : index
    %c0_2 = arith.constant 0 : index
    %1 = vector.load %arg2[%c0_1, %c0_2] : memref<40x32xbf16, #tpu.memory_space<vmem>>, vector<40x32xbf16>
    %cst = arith.constant dense<0.000000e+00> : vector<16x32xf32>
    %2 = tpu.matmul %0, %1, %cst {dimension_numbers = #tpu.dot_dimension_numbers<[1], [0], [0], [1], [0, 0, 1, 1], [], []>} : vector<16x40xbf16>, vector<40x32xbf16>, vector<16x32xf32> -> vector<16x32xf32>
    %c0_3 = arith.constant 0 : index
    %c0_4 = arith.constant 0 : index
    %3 = vector.load %arg3[%c0_3, %c0_4] : memref<1x32xf32, #tpu.memory_space<vmem>>, vector<1x32xf32>
    %4 = vector.broadcast %3 : vector<1x32xf32> to vector<16x32xf32>
    %5 = arith.addf %2, %4 : vector<16x32xf32>
    %cst_5 = arith.constant 0.000000e+00 : f32
    %6 = vector.broadcast %cst_5 : f32 to vector<16x32xf32>
    %7 = arith.maximumf %5, %6 : vector<16x32xf32>
    %8 = arith.truncf %7 : vector<16x32xf32> to vector<16x32xbf16>
    %c0_6 = arith.constant 0 : index
    %c0_7 = arith.constant 0 : index
    %9 = vector.load %arg4[%c0_6, %c0_7] : memref<32x8xbf16, #tpu.memory_space<vmem>>, vector<32x8xbf16>
    %cst_8 = arith.constant dense<0.000000e+00> : vector<16x8xf32>
    %10 = tpu.matmul %8, %9, %cst_8 {dimension_numbers = #tpu.dot_dimension_numbers<[1], [0], [0], [1], [0, 0, 1, 1], [], []>} : vector<16x32xbf16>, vector<32x8xbf16>, vector<16x8xf32> -> vector<16x8xf32>
    %c0_9 = arith.constant 0 : index
    %c0_10 = arith.constant 0 : index
    %11 = vector.load %arg5[%c0_9, %c0_10] : memref<1x8xf32, #tpu.memory_space<vmem>>, vector<1x8xf32>
    %12 = vector.broadcast %11 : vector<1x8xf32> to vector<16x8xf32>
    %13 = arith.addf %10, %12 : vector<16x8xf32>
    %c0_11 = arith.constant 0 : index
    %c0_12 = arith.constant 0 : index
    %14 = vector.load %arg6[%c0_11, %c0_12] : memref<16x8xf32, #tpu.memory_space<vmem>>, vector<16x8xf32>
    tpu.vector_store %arg6[%c0_11, %c0_12], %13 {strides = array<i32>} : memref<16x8xf32, #tpu.memory_space<vmem>>, vector<16x8xf32>,
    return
  }
  func.func @transform_0(%arg0: i32) -> (i32, i32) {
    %c0_i32 = arith.constant 0 : i32
    %c0_i32_0 = arith.constant 0 : i32
    return %arg0, %c0_i32 : i32, i32
  }
  func.func @transform_1(%arg0: i32) -> (i32, i32) {
    %c0_i32 = arith.constant 0 : i32
    %c0_i32_0 = arith.constant 0 : i32
    %c0_i32_1 = arith.constant 0 : i32
    return %c0_i32, %c0_i32_0 : i32, i32
  }
  func.func @transform_2(%arg0: i32) -> (i32, i32) {
    %c0_i32 = arith.constant 0 : i32
    %c0_i32_0 = arith.constant 0 : i32
    %c0_i32_1 = arith.constant 0 : i32
    return %c0_i32, %c0_i32_0 : i32, i32
  }
  func.func @transform_3(%arg0: i32) -> (i32, i32) {
    %c0_i32 = arith.constant 0 : i32
    %c0_i32_0 = arith.constant 0 : i32
    %c0_i32_1 = arith.constant 0 : i32
    return %c0_i32, %c0_i32_0 : i32, i32
  }
  func.func @transform_4(%arg0: i32) -> (i32, i32) {
    %c0_i32 = arith.constant 0 : i32
    %c0_i32_0 = arith.constant 0 : i32
    %c0_i32_1 = arith.constant 0 : i32
    return %c0_i32, %c0_i32_0 : i32, i32
  }
  func.func @transform_5(%arg0: i32) -> (i32, i32) {
    %c0_i32 = arith.constant 0 : i32
    %c0_i32_0 = arith.constant 0 : i32
    return %arg0, %c0_i32 : i32, i32
  }
}

</mosaic_0001>

<bundles_post_ra>
// kernel: tpu_custom_call.1
= control target key start
LH: loop header
LB: loop body
LE: loop exit
PB: predicated region body
PF: predicated region fallthrough
CT: control target
= control target key end

     0   :  { %v225_v0 = vmov 0.0   ;;  %vm226_vm0 = vmmov 0   ;;  %vm59_vm1 = vcmask 1043456   ;;  %vm55_vm2 = vcmask 326656   ;;  %s287_s1 = inlined_call_operand.vmem [shape: bf16[40,32], index: 1, kind: input, shape index: {}]   ;;  %s288_s0 = inlined_call_operand.vmem [shape: bf16[16,40], index: 0, kind: input, shape index: {}]   ;;  %s289_s3 = inlined_call_operand.vmem [shape: bf16[32,8], index: 3, kind: input, shape index: {}]   ;;  %s290_s2 = inlined_call_operand.vmem [shape: f32[1,32], index: 2, kind: input, shape index: {}]   ;;  %s291_s4 = inlined_call_operand.vmem [shape: f32[1,8], index: 4, kind: input, shape index: {}]   ;;  %s292_s5 = inlined_call_operand.vmem [shape: f32[16,8], index: 5, kind: output, shape index: {}]  }
   0x1   :  { %199 = vmatprep.subr.bf16.mxu0 %v225_v0  ;;  %v219_v1 = vld [vmem:[%s287_s1] sm:$0xff]   ;;  %205 = vmatprep.mubr.msk.bf16.mxu0 %vm226_vm0, %v225_v0  ;;  %v220_v2 = vld [vmem:[%s287_s1 + $0x8] sm:$0xff]   ;;  %v221_v3 = vld [vmem:[%s287_s1 + $0x10] ss:$0 sps:$4 sm:$0xff]   ;;  %vm130_vm3 = vcmask 261120   ;;  %vm175_vm4 = vcmask 64512  }
   0x2   :  { %209 = vmatprep.subr.bf16.mxu1 %v225_v0  ;;  %213 = vmatprep.mubr.msk.bf16.mxu1 %vm226_vm0, %v225_v0  ;;  %v61_v4 = vsel %vm59_vm1, %v221_v3, 0  ;;  %v222_v5 = vld [vmem:[%s288_s0] sm:$0xff]   ;;  %v224_v7 = vld [vmem:[%s289_s3 + $0x8] sm:$0xff]  }
   0x3   :  { %200 = vmatpush3.bf16.msra.mxu0 %v219_v1  ;;  %v223_v6 = vld [vmem:[%s289_s3] sm:$0xff]  }
   0x4   :  { %201 = vmatprep.subr.bf16.mxu0 %v225_v0  ;;  %210 = vmatpush3.bf16.msra.mxu1 %v223_v6  ;;  %v182_v8 = vld [vmem:[%s290_s2] ss:$0 sm:$0xff] }
   0x5   :  { %211 = vmatprep.subr.bf16.mxu1 %v225_v0  ;;  %v188_v18 = vld [vmem:[%s291_s4] ss:$0 sm:$0xff] }
   0x7   :  { %202 = vmatpush3.bf16.msra.mxu0 %v220_v2 }
   0x8   :  { %203 = vmatprep.subr.bf16.mxu0 %v225_v0  ;;  %212 = vmatpush3.bf16.msra.mxu1 %v224_v7 }
   0xb   :  { %204 = vmatpush3.bf16.msra.mxu0 %v61_v4 }
   0xe   :  { %206 = vmatmul.mubr.msk.bf16.vlgmr.msra.gmra.mrb[0].mxu0 %vm55_vm2, %v222_v5 }
  0xe1   :  { %v97_v9 = vpop.f32.mrb[0].mxu0 }
  0xe2   :  { %v98_v10 = vadd.f32 %v182_v8, %v97_v9  ;;  %v207_v11 = vpop.f32.mrb[1].mxu0 }
  0xe3   :  { %v100_v12 = vpop.f32.mrb[2].mxu0 }
  0xe4   :  { %v101_v13 = vadd.f32 %v182_v8, %v100_v12  ;;  %v208_v14 = vpop.f32.mrb[3].mxu0  ;;  %v104_v15 = vmax.f32 %v98_v10, 0.0 }
  0xe6   :  { %v105_v16 = vmax.f32 %v101_v13, 0.0 }
  0xe8   :  { %v106_v17 = vpack.c.bf16 %v105_v16, %v104_v15 }
  0xea   :  { %214 = vmatmul.mubr.msk.bf16.vlgmr.msra.gmra.mrb[0].mxu1 %vm130_vm3, %v106_v17 }
 0x1bd   :  { %v168_v19 = vpop.f32.mrb[0].mxu1 }
 0x1be   :  { %v169_v20 = vadd.f32 %v188_v18, %v168_v19  ;;  %v215_v21 = vpop.f32.mrb[1].mxu1 }
 0x1bf   :  { %v171_v22 = vpop.f32.mrb[2].mxu1 }
 0x1c0   :  { %176 = vst.msk [vmem:[%s292_s5] sm:$0xff] %vm175_vm4, %v169_v20  ;;  %v172_v23 = vadd.f32 %v188_v18, %v171_v22  ;;  %v216_v24 = vpop.f32.mrb[3].mxu1 }
 0x1c2   :  { %177 = vst.msk [vmem:[%s292_s5 + $0x8] sm:$0xff] %vm175_vm4, %v172_v23 }

</bundles_post_ra>
